<compile_context>
chip_gen: v6e
topology: v6e:2x2x1
jax: 0.10.0
libtpu: 0.0.40
codegen_flags: <defaults>
</compile_context>

<pallas_src>
import math
import functools

import jax
import jax.numpy as jnp
import numpy as np
from jax.experimental import pallas as pl
from jax.experimental.pallas import tpu as pltpu


# ----------------------------------------------------------------------------
# Kernel: one batch element per grid step, all heads computed with batched
# einsums (no lane-dim slicing, no concatenate).
# ----------------------------------------------------------------------------
def _attention_kernel(x_ref,
                      wq_ref, bq_ref,
                      wk_ref, bk_ref,
                      wv_ref, bv_ref,
                      wo_ref, bo_ref,
                      out_ref,
                      *, heads, scale):
    x = x_ref[0]                                   # (N, D)
    N, D = x.shape

    # Broadcast once so every contraction below is a canonical batched matmul
    # (batch dim = heads), which maps directly onto MXU dot_generals.
    xb = jnp.broadcast_to(x, (heads, N, D))        # (H, N, D)

    q = jnp.einsum('hnd,hdk->hnk', xb, wq_ref[...],
                   preferred_element_type=jnp.float32) + bq_ref[...]
    k = jnp.einsum('hnd,hdk->hnk', xb, wk_ref[...],
                   preferred_element_type=jnp.float32) + bk_ref[...]
    v = jnp.einsum('hnd,hdk->hnk', xb, wv_ref[...],
                   preferred_element_type=jnp.float32) + bv_ref[...]

    dots = jnp.einsum('hnk,hmk->hnm', q, k,
                      preferred_element_type=jnp.float32) * scale   # (H, N, N)

    # softmax over the last axis (numerically stable)
    m = jnp.max(dots, axis=-1, keepdims=True)
    e = jnp.exp(dots - m)
    attn = e * pl.reciprocal(jnp.sum(e, axis=-1, keepdims=True), approx=True)

    o = jnp.einsum('hnm,hmk->hnk', attn, v,
                   preferred_element_type=jnp.float32)              # (H, N, dh)

    # Fold the per-head output projection into the nn1 matmul: the concat over
    # heads becomes a sum over the head axis of per-head (dh x D) matmuls.
    proj = jnp.einsum('hnk,hkd->hnd', o, wo_ref[...],
                      preferred_element_type=jnp.float32)           # (H, N, D)
    out = jnp.sum(proj, axis=0) + bo_ref[...]                       # (N, D)

    # dropout (do1) is identity in eval mode
    out_ref[0] = out.astype(out_ref.dtype)


# ----------------------------------------------------------------------------
# Wrapper
# ----------------------------------------------------------------------------
def attention_forward(x, params, *, heads):
    """x: (B, N, D) float32. params: dict with wqkv (D,3D), bqkv (3D,),
    wo (D,D), bo (D,)  -- all in x @ W (+ b) layout."""
    B, N, D = x.shape
    assert D % heads == 0
    dh = D // heads
    scale = float(D) ** -0.5        # matches the module: self.scale = dim**-0.5

    wqkv, bqkv = params["wqkv"], params["bqkv"]
    wo, bo = params["wo"], params["bo"]

    # Pre-split / pre-transpose the weights on the host side so the kernel
    # never slices the lane dimension or concatenates heads.
    # qkv column layout is (qkv=3, heads, dh), matching
    # rearrange('b n (qkv h d) -> qkv b h n d').
    wqkv_r = wqkv.reshape(D, 3, heads, dh)
    wq = jnp.transpose(wqkv_r[:, 0], (1, 0, 2))     # (H, D, dh)
    wk = jnp.transpose(wqkv_r[:, 1], (1, 0, 2))     # (H, D, dh)
    wv = jnp.transpose(wqkv_r[:, 2], (1, 0, 2))     # (H, D, dh)
    bqkv_r = bqkv.reshape(3, heads, 1, dh)
    bq, bk, bv = bqkv_r[0], bqkv_r[1], bqkv_r[2]    # (H, 1, dh) each
    wo_h = wo.reshape(heads, dh, D)                 # (H, dh, D)
    bo_r = bo.reshape(1, D)                         # (1, D)

    weights = [wq, bq, wk, bk, wv, bv, wo_h, bo_r]

    # Weights are constant across the grid: keep them resident in VMEM as
    # whole-array refs (single buffer, no per-step DMA / double-buffering).
    weight_spec = pl.BlockSpec(memory_space=pltpu.MemorySpace.VMEM)

    # Explicit VMEM budget sized from the actual footprint (weights + the
    # double-buffered activation blocks + rough per-step intermediates).
    weight_bytes = sum(int(np.prod(w.shape)) * w.dtype.itemsize for w in weights)
    act_bytes = 2 * 2 * N * D * 4                                  # x & out, 2-deep
    interm_bytes = heads * N * (3 * dh + 2 * N + D) * 4            # q,k,v,dots,proj
    vmem_limit = int(min(max(2 * (weight_bytes + act_bytes + interm_bytes),
                             32 * 1024 * 1024),
                         64 * 1024 * 1024))

    kernel = functools.partial(_attention_kernel, heads=heads, scale=scale)

    return pl.pallas_call(
        kernel,
        out_shape=jax.ShapeDtypeStruct((B, N, D), x.dtype),
        grid_spec=pltpu.PrefetchScalarGridSpec(
            num_scalar_prefetch=0,
            grid=(B,),
            in_specs=[pl.BlockSpec((1, N, D), lambda b: (b, 0, 0))]
                     + [weight_spec] * len(weights),
            out_specs=pl.BlockSpec((1, N, D), lambda b: (b, 0, 0)),
        ),
        compiler_params=pltpu.CompilerParams(
            dimension_semantics=("parallel",),
            vmem_limit_bytes=vmem_limit),
    )(x, *weights)


# ----------------------------------------------------------------------------
# Deterministic parameter init (mirrors the module __init__)
# ----------------------------------------------------------------------------
def init_params(key, dim):
    def xavier(k, out_f, in_f):
        a = math.sqrt(6.0 / (in_f + out_f))
        # PyTorch Linear stores (out, in); transpose to (in, out) for x @ W.
        return jax.random.uniform(k, (out_f, in_f), jnp.float32, -a, a).T

    k1, k2, k3 = jax.random.split(key, 3)
    return {
        "wqkv": xavier(k1, dim * 3, dim),                 # (dim, 3*dim)
        "bqkv": jnp.zeros((dim * 3,), jnp.float32),       # zero-init per module
        "wo":   xavier(k2, dim, dim),                     # (dim, dim)
        "bo":   0.01 * jax.random.normal(k3, (dim,), jnp.float32),
    }


# ----------------------------------------------------------------------------
# Pure-JAX reference (same math / original layout) for correctness check
# ----------------------------------------------------------------------------
def ref_forward(x, params, *, heads):
    B, N, D = x.shape
    dh = D // heads
    scale = float(D) ** -0.5
    qkv = x @ params["wqkv"] + params["bqkv"]
    q, k, v = jnp.split(qkv, 3, axis=-1)
    q = q.reshape(B, N, heads, dh).transpose(0, 2, 1, 3)
    k = k.reshape(B, N, heads, dh).transpose(0, 2, 1, 3)
    v = v.reshape(B, N, heads, dh).transpose(0, 2, 1, 3)
    dots = jnp.einsum("bhid,bhjd->bhij", q, k) * scale
    attn = jax.nn.softmax(dots, axis=-1)
    o = jnp.einsum("bhij,bhjd->bhid", attn, v)
    o = o.transpose(0, 2, 1, 3).reshape(B, N, D)
    return o @ params["wo"] + params["bo"]


# ----------------------------------------------------------------------------
if __name__ == "__main__":
    B, N, D, heads = 2, 8, 32, 4

    key = jax.random.PRNGKey(0)
    kx, kp = jax.random.split(key)
    x = jax.random.normal(kx, (B, N, D), jnp.float32)
    params = init_params(kp, D)

    out = attention_forward(x, params, heads=heads)
    out = jax.block_until_ready(out)

    ref = ref_forward(x, params, heads=heads)
    # tolerance relaxed slightly because the softmax denominator uses the
    # hardware approximate reciprocal (EUP) per the performance feedback.
    np.testing.assert_allclose(np.asarray(out), np.asarray(ref),
                               rtol=2e-3, atol=2e-3)

    print("KERNEL_OK")
</pallas_src>

<mosaic_0001>
module attributes {stable_mosaic.version = 11 : i64} {
  func.func @_attention_kernel(%arg0: i32, %arg1: memref<1x8x32xf32, #tpu.memory_space<vmem>>, %arg2: memref<4x32x8xf32, #tpu.memory_space<vmem>>, %arg3: memref<4x1x8xf32, #tpu.memory_space<vmem>>, %arg4: memref<4x32x8xf32, #tpu.memory_space<vmem>>, %arg5: memref<4x1x8xf32, #tpu.memory_space<vmem>>, %arg6: memref<4x32x8xf32, #tpu.memory_space<vmem>>, %arg7: memref<4x1x8xf32, #tpu.memory_space<vmem>>, %arg8: memref<4x8x32xf32, #tpu.memory_space<vmem>>, %arg9: memref<1x32xf32, #tpu.memory_space<vmem>>, %arg10: memref<1x8x32xf32, #tpu.memory_space<vmem>>) attributes {dimension_semantics = [#tpu.dimension_semantics<parallel>], iteration_bounds = array<i64: 2>, scalar_prefetch = 0 : i64, scratch_operands = 0 : i64, tpu.core_type = #tpu.core_type<tc>, window_params = [{transform_indices = @transform_0, window_bounds = array<i64: 1, 8, 32>}, {pipeline_mode = #tpu.pipeline_mode<synchronous>, transform_indices = @transform_1, window_bounds = array<i64: 4, 32, 8>}, {pipeline_mode = #tpu.pipeline_mode<synchronous>, transform_indices = @transform_2, window_bounds = array<i64: 4, 1, 8>}, {pipeline_mode = #tpu.pipeline_mode<synchronous>, transform_indices = @transform_3, window_bounds = array<i64: 4, 32, 8>}, {pipeline_mode = #tpu.pipeline_mode<synchronous>, transform_indices = @transform_4, window_bounds = array<i64: 4, 1, 8>}, {pipeline_mode = #tpu.pipeline_mode<synchronous>, transform_indices = @transform_5, window_bounds = array<i64: 4, 32, 8>}, {pipeline_mode = #tpu.pipeline_mode<synchronous>, transform_indices = @transform_6, window_bounds = array<i64: 4, 1, 8>}, {pipeline_mode = #tpu.pipeline_mode<synchronous>, transform_indices = @transform_7, window_bounds = array<i64: 4, 8, 32>}, {pipeline_mode = #tpu.pipeline_mode<synchronous>, transform_indices = @transform_8, window_bounds = array<i64: 1, 32>}, {transform_indices = @transform_9, window_bounds = array<i64: 1, 8, 32>}]} {
    %c0 = arith.constant 0 : index
    %c0_0 = arith.constant 0 : index
    %c0_1 = arith.constant 0 : index
    %0 = vector.load %arg1[%c0, %c0_0, %c0_1] : memref<1x8x32xf32, #tpu.memory_space<vmem>>, vector<1x8x32xf32>
    %1 = vector.shape_cast %0 : vector<1x8x32xf32> to vector<8x32xf32>
    %2 = vector.shape_cast %1 : vector<8x32xf32> to vector<1x8x32xf32>
    %3 = vector.broadcast %2 : vector<1x8x32xf32> to vector<4x8x32xf32>
    %c0_2 = arith.constant 0 : index
    %c0_3 = arith.constant 0 : index
    %c0_4 = arith.constant 0 : index
    %4 = vector.load %arg2[%c0_2, %c0_3, %c0_4] : memref<4x32x8xf32, #tpu.memory_space<vmem>>, vector<4x32x8xf32>
    "tpu.trace_start"() <{level = 10 : i32, message = "hnd,hdk->hnk"}> : () -> ()
    %cst = arith.constant dense<0.000000e+00> : vector<4x8x8xf32>
    %5 = tpu.matmul %3, %4, %cst {dimension_numbers = #tpu.dot_dimension_numbers<[2], [1], [1], [2], [0, 0, 0, 1, 1, 2], [0], [0]>} : vector<4x8x32xf32>, vector<4x32x8xf32>, vector<4x8x8xf32> -> vector<4x8x8xf32>
    "tpu.trace_stop"() : () -> ()
    %c0_5 = arith.constant 0 : index
    %c0_6 = arith.constant 0 : index
    %c0_7 = arith.constant 0 : index
    %6 = vector.load %arg3[%c0_5, %c0_6, %c0_7] : memref<4x1x8xf32, #tpu.memory_space<vmem>>, vector<4x1x8xf32>
    %7 = vector.broadcast %6 : vector<4x1x8xf32> to vector<4x8x8xf32>
    %8 = arith.addf %5, %7 : vector<4x8x8xf32>
    %c0_8 = arith.constant 0 : index
    %c0_9 = arith.constant 0 : index
    %c0_10 = arith.constant 0 : index
    %9 = vector.load %arg4[%c0_8, %c0_9, %c0_10] : memref<4x32x8xf32, #tpu.memory_space<vmem>>, vector<4x32x8xf32>
    "tpu.trace_start"() <{level = 10 : i32, message = "hnd,hdk->hnk"}> : () -> ()
    %cst_11 = arith.constant dense<0.000000e+00> : vector<4x8x8xf32>
    %10 = tpu.matmul %3, %9, %cst_11 {dimension_numbers = #tpu.dot_dimension_numbers<[2], [1], [1], [2], [0, 0, 0, 1, 1, 2], [0], [0]>} : vector<4x8x32xf32>, vector<4x32x8xf32>, vector<4x8x8xf32> -> vector<4x8x8xf32>
    "tpu.trace_stop"() : () -> ()
    %c0_12 = arith.constant 0 : index
    %c0_13 = arith.constant 0 : index
    %c0_14 = arith.constant 0 : index
    %11 = vector.load %arg5[%c0_12, %c0_13, %c0_14] : memref<4x1x8xf32, #tpu.memory_space<vmem>>, vector<4x1x8xf32>
    %12 = vector.broadcast %11 : vector<4x1x8xf32> to vector<4x8x8xf32>
    %13 = arith.addf %10, %12 : vector<4x8x8xf32>
    %c0_15 = arith.constant 0 : index
    %c0_16 = arith.constant 0 : index
    %c0_17 = arith.constant 0 : index
    %14 = vector.load %arg6[%c0_15, %c0_16, %c0_17] : memref<4x32x8xf32, #tpu.memory_space<vmem>>, vector<4x32x8xf32>
    "tpu.trace_start"() <{level = 10 : i32, message = "hnd,hdk->hnk"}> : () -> ()
    %cst_18 = arith.constant dense<0.000000e+00> : vector<4x8x8xf32>
    %15 = tpu.matmul %3, %14, %cst_18 {dimension_numbers = #tpu.dot_dimension_numbers<[2], [1], [1], [2], [0, 0, 0, 1, 1, 2], [0], [0]>} : vector<4x8x32xf32>, vector<4x32x8xf32>, vector<4x8x8xf32> -> vector<4x8x8xf32>
    "tpu.trace_stop"() : () -> ()
    %c0_19 = arith.constant 0 : index
    %c0_20 = arith.constant 0 : index
    %c0_21 = arith.constant 0 : index
    %16 = vector.load %arg7[%c0_19, %c0_20, %c0_21] : memref<4x1x8xf32, #tpu.memory_space<vmem>>, vector<4x1x8xf32>
    %17 = vector.broadcast %16 : vector<4x1x8xf32> to vector<4x8x8xf32>
    %18 = arith.addf %15, %17 : vector<4x8x8xf32>
    "tpu.trace_start"() <{level = 10 : i32, message = "hnk,hmk->hnm"}> : () -> ()
    %cst_22 = arith.constant dense<0.000000e+00> : vector<4x8x8xf32>
    %19 = tpu.matmul %8, %13, %cst_22 {dimension_numbers = #tpu.dot_dimension_numbers<[2], [2], [1], [1], [0, 0, 0, 1, 1, 1], [0], [0]>} : vector<4x8x8xf32>, vector<4x8x8xf32>, vector<4x8x8xf32> -> vector<4x8x8xf32>
    "tpu.trace_stop"() : () -> ()
    %cst_23 = arith.constant 0.176776692 : f32
    %20 = vector.broadcast %cst_23 : f32 to vector<4x8x8xf32>
    %21 = arith.mulf %19, %20 : vector<4x8x8xf32>
    %cst_24 = arith.constant dense<0xFF800000> : vector<4x8xf32>
    %22 = vector.multi_reduction <maximumf>, %21, %cst_24 [2] : vector<4x8x8xf32> to vector<4x8xf32>
    %23 = vector.shape_cast %22 : vector<4x8xf32> to vector<4x8x1xf32>
    %24 = vector.broadcast %23 : vector<4x8x1xf32> to vector<4x8x8xf32>
    %25 = arith.subf %21, %24 : vector<4x8x8xf32>
    %26 = math.exp %25 : vector<4x8x8xf32>
    %cst_25 = arith.constant dense<0.000000e+00> : vector<4x8xf32>
    %27 = vector.multi_reduction <add>, %26, %cst_25 [2] : vector<4x8x8xf32> to vector<4x8xf32>
    %28 = vector.shape_cast %27 : vector<4x8xf32> to vector<4x8x1xf32>
    %29 = tpu.reciprocal %28 {approx = true} : vector<4x8x1xf32> -> vector<4x8x1xf32>
    %30 = vector.broadcast %29 : vector<4x8x1xf32> to vector<4x8x8xf32>
    %31 = arith.mulf %26, %30 : vector<4x8x8xf32>
    "tpu.trace_start"() <{level = 10 : i32, message = "hnm,hmk->hnk"}> : () -> ()
    %cst_26 = arith.constant dense<0.000000e+00> : vector<4x8x8xf32>
    %32 = tpu.matmul %31, %18, %cst_26 {dimension_numbers = #tpu.dot_dimension_numbers<[2], [1], [1], [2], [0, 0, 0, 1, 1, 2], [0], [0]>} : vector<4x8x8xf32>, vector<4x8x8xf32>, vector<4x8x8xf32> -> vector<4x8x8xf32>
    "tpu.trace_stop"() : () -> ()
    %c0_27 = arith.constant 0 : index
    %c0_28 = arith.constant 0 : index
    %c0_29 = arith.constant 0 : index
    %33 = vector.load %arg8[%c0_27, %c0_28, %c0_29] : memref<4x8x32xf32, #tpu.memory_space<vmem>>, vector<4x8x32xf32>
    "tpu.trace_start"() <{level = 10 : i32, message = "hnk,hkd->hnd"}> : () -> ()
    %cst_30 = arith.constant dense<0.000000e+00> : vector<4x8x32xf32>
    %34 = tpu.matmul %32, %33, %cst_30 {dimension_numbers = #tpu.dot_dimension_numbers<[2], [1], [1], [2], [0, 0, 0, 1, 1, 2], [0], [0]>} : vector<4x8x8xf32>, vector<4x8x32xf32>, vector<4x8x32xf32> -> vector<4x8x32xf32>
    "tpu.trace_stop"() : () -> ()
    %cst_31 = arith.constant dense<0.000000e+00> : vector<8x32xf32>
    %35 = vector.multi_reduction <add>, %34, %cst_31 [0] : vector<4x8x32xf32> to vector<8x32xf32>
    %c0_32 = arith.constant 0 : index
    %c0_33 = arith.constant 0 : index
    %36 = vector.load %arg9[%c0_32, %c0_33] : memref<1x32xf32, #tpu.memory_space<vmem>>, vector<1x32xf32>
    %37 = vector.broadcast %36 : vector<1x32xf32> to vector<8x32xf32>
    %38 = arith.addf %35, %37 : vector<8x32xf32>
    %c0_34 = arith.constant 0 : index
    %c0_35 = arith.constant 0 : index
    %c0_36 = arith.constant 0 : index
    %39 = vector.load %arg10[%c0_34, %c0_35, %c0_36] : memref<1x8x32xf32, #tpu.memory_space<vmem>>, vector<1x8x32xf32>
    %40 = vector.shape_cast %39 : vector<1x8x32xf32> to vector<8x32xf32>
    %41 = vector.shape_cast %38 : vector<8x32xf32> to vector<1x8x32xf32>
    tpu.vector_store %arg10[%c0_34, %c0_35, %c0_36], %41 {strides = array<i32>} : memref<1x8x32xf32, #tpu.memory_space<vmem>>, vector<1x8x32xf32>,
    return
  }
  func.func @transform_0(%arg0: i32) -> (i32, i32, i32) {
    %c0_i32 = arith.constant 0 : i32
    %c0_i32_0 = arith.constant 0 : i32
    %c0_i32_1 = arith.constant 0 : i32
    return %arg0, %c0_i32, %c0_i32_0 : i32, i32, i32
  }
  func.func @transform_1(%arg0: i32) -> (i32, i32, i32) {
    %c0_i32 = arith.constant 0 : i32
    %c0_i32_0 = arith.constant 0 : i32
    %c0_i32_1 = arith.constant 0 : i32
    %c0_i32_2 = arith.constant 0 : i32
    return %c0_i32, %c0_i32_0, %c0_i32_1 : i32, i32, i32
  }
  func.func @transform_2(%arg0: i32) -> (i32, i32, i32) {
    %c0_i32 = arith.constant 0 : i32
    %c0_i32_0 = arith.constant 0 : i32
    %c0_i32_1 = arith.constant 0 : i32
    %c0_i32_2 = arith.constant 0 : i32
    return %c0_i32, %c0_i32_0, %c0_i32_1 : i32, i32, i32
  }
  func.func @transform_3(%arg0: i32) -> (i32, i32, i32) {
    %c0_i32 = arith.constant 0 : i32
    %c0_i32_0 = arith.constant 0 : i32
    %c0_i32_1 = arith.constant 0 : i32
    %c0_i32_2 = arith.constant 0 : i32
    return %c0_i32, %c0_i32_0, %c0_i32_1 : i32, i32, i32
  }
  func.func @transform_4(%arg0: i32) -> (i32, i32, i32) {
    %c0_i32 = arith.constant 0 : i32
    %c0_i32_0 = arith.constant 0 : i32
    %c0_i32_1 = arith.constant 0 : i32
    %c0_i32_2 = arith.constant 0 : i32
    return %c0_i32, %c0_i32_0, %c0_i32_1 : i32, i32, i32
  }
  func.func @transform_5(%arg0: i32) -> (i32, i32, i32) {
    %c0_i32 = arith.constant 0 : i32
    %c0_i32_0 = arith.constant 0 : i32
    %c0_i32_1 = arith.constant 0 : i32
    %c0_i32_2 = arith.constant 0 : i32
    return %c0_i32, %c0_i32_0, %c0_i32_1 : i32, i32, i32
  }
  func.func @transform_6(%arg0: i32) -> (i32, i32, i32) {
    %c0_i32 = arith.constant 0 : i32
    %c0_i32_0 = arith.constant 0 : i32
    %c0_i32_1 = arith.constant 0 : i32
    %c0_i32_2 = arith.constant 0 : i32
    return %c0_i32, %c0_i32_0, %c0_i32_1 : i32, i32, i32
  }
  func.func @transform_7(%arg0: i32) -> (i32, i32, i32) {
    %c0_i32 = arith.constant 0 : i32
    %c0_i32_0 = arith.constant 0 : i32
    %c0_i32_1 = arith.constant 0 : i32
    %c0_i32_2 = arith.constant 0 : i32
    return %c0_i32, %c0_i32_0, %c0_i32_1 : i32, i32, i32
  }
  func.func @transform_8(%arg0: i32) -> (i32, i32) {
    %c0_i32 = arith.constant 0 : i32
    %c0_i32_0 = arith.constant 0 : i32
    %c0_i32_1 = arith.constant 0 : i32
    return %c0_i32, %c0_i32_0 : i32, i32
  }
  func.func @transform_9(%arg0: i32) -> (i32, i32, i32) {
    %c0_i32 = arith.constant 0 : i32
    %c0_i32_0 = arith.constant 0 : i32
    %c0_i32_1 = arith.constant 0 : i32
    return %arg0, %c0_i32, %c0_i32_0 : i32, i32, i32
  }
}

</mosaic_0001>

<bundles_post_ra>
// kernel: tpu_custom_call.1
= control target key start
LH: loop header
LB: loop body
LE: loop exit
PB: predicated region body
PF: predicated region fallthrough
CT: control target
= control target key end

     0   :  { %14 = vsyncpa [#allocation3], 0  ;;  %s3285_s0 = inlined_call_operand.vmem [shape: f32[2,8,32], index: 0, kind: input, shape index: {}]   ;;  %s3286_s1 = inlined_call_operand.vmem [shape: f32[4,32,8], index: 1, kind: input, shape index: {}]   ;;  %s3287_s2 = inlined_call_operand.vmem [shape: f32[4,1,8], index: 2, kind: input, shape index: {}]   ;;  %s3288_s3 = inlined_call_operand.vmem [shape: f32[4,32,8], index: 3, kind: input, shape index: {}]   ;;  %s3289_s4 = inlined_call_operand.vmem [shape: f32[4,1,8], index: 4, kind: input, shape index: {}]   ;;  %s3290_s5 = inlined_call_operand.vmem [shape: f32[4,32,8], index: 5, kind: input, shape index: {}]   ;;  %s3291_s6 = inlined_call_operand.vmem [shape: f32[4,1,8], index: 6, kind: input, shape index: {}]   ;;  %s3292_s7 = inlined_call_operand.vmem [shape: f32[4,8,32], index: 7, kind: input, shape index: {}]   ;;  %s3293_s8 = inlined_call_operand.vmem [shape: f32[1,32], index: 8, kind: input, shape index: {}]   ;;  %s3294_s9 = inlined_call_operand.hbm [shape: f32[2,8,32], index: 9, kind: output, shape index: {}]  }
   0x1   :  { %16 = vsyncpa [#allocation3 + $0x1], 0  ;;  %s2834_s30 = smov 0   ;;  %s2836_s10 = smov 0  }
   0x2   :  { %s2838_s11 = smov 0   ;;  %s2840_s12 = smov 0  }
   0x3 LB: > { %s2855_s13 = sadd.s32 4294967295, %s2779_s12   ;;  %s2335_s14 = sadd.s32 4294967294, %s2779_s12   ;;  %s2779_s12 = sphi %s2840_s12, %s3300_s12   ;;  %s2775_s11 = sphi %s2838_s11, %s3299_s11   ;;  %s2771_s10 = sphi %s2836_s10, %s3298_s10   ;;  %s2767_s30 = sphi %s2834_s30, %s3297_s30  }
   0x4   : > { %s2859_s15 = sadd.s32 1, %s2779_s12   ;;  %s223_s16 = sadd.s32 1, %s2775_s11 }
   0x5   : > { %s220_s17 = ssub.s32 %s2779_s12, %s2859_s15  ;;  %p233_p0 = scmp.ne.s32.totalorder %s2775_s11, %s2771_s10 }
   0x6   : > { %p221_p1 = scmp.eq.s32.totalorder %s220_s17, 0  ;;  %p234_p2 = scmp.eq.s32.totalorder %s2855_s13, 1 }
   0x7   : > { %p239_p3 = scmp.ne.s32.totalorder %s2771_s10, %s2767_s30  ;;  %p240_p4 = scmp.eq.s32.totalorder %s2335_s14, 1 }
   0x8   : > { %s2870_s18 = scalar_select %p221_p1, %s2775_s11, %s223_s16  }
   0x9   : > { %p2872_p5 = por %p234_p2, %p233_p0  ;;  %p2876_p6 = por %p240_p4, %p239_p3 }
   0xa   : > { %p2338_p7 = scmp.ge.s32.totalorder %s2779_s12, 1  ;;  %p289_p8 = scmp.lt.s32.totalorder %s2779_s12, 3 }
   0xc   : > { %p290_p9 = pnand %p2338_p7, %p289_p8 }
   0xd   : > { %p324_p10 = scmp.lt.s32.totalorder (!%p290_p9), %s2855_s13, 1  ;;  %s2383_s26 = sshll.u32 (!%p290_p9), %s2855_s13, 7 }
   0xe   : > { %293 = sbr.rel (%p290_p9) target bundleno = 1172 (0x494), region = 56  ;;  %s2274_s16 = scalar_lea.hbm (!%p290_p9), %s3294_s9, %s2383_s26 }
   0xf   : > { %s2783_s24 = smov (!%p290_p9), [#allocation2]  }
  0x13   : > { %v332_v0 = vld [vmem:[%s3286_s1 + $0x18] sm:$0xff]  ;;  %v2781_v2 = vmov 0.0   ;;  %v331_v3 = vld [vmem:[%s3286_s1 + $0x10] sm:$0xff]  ;;  %s325_s29 = scalar_select %p324_p10, %s2855_s13, 1  ;;  %v330_v5 = vld [vmem:[%s3286_s1 + $0x8] sm:$0xff]  ;;  %vm373_vm0 = vcmask 261120  }
  0x14   : > { %v336_v1 = vld [vmem:[%s3286_s1 + $0x38] sm:$0xff]  ;;  %2470 = vmatprep.subr.mxu0 %v2781_v2  ;;  %2481 = vmatprep.subr.mxu1 %v2781_v2  ;;  %v335_v4 = vld [vmem:[%s3286_s1 + $0x30] sm:$0xff]  ;;  %v334_v6 = vld [vmem:[%s3286_s1 + $0x28] sm:$0xff]  ;;  %vm2782_vm1 = vmmov 0   ;;  %vm1305_vm2 = vcmask 64512   ;;  %s2723_s13 = sshll.u32 %s2783_s24, 4  ;;  %s2724_s13 = int_to_ptr.vmem [resolvable:$false] %s2723_s13 }
  0x15   : > { %2471 = vmatpush3.msra.mxu0 %v332_v0  ;;  %2482 = vmatpush3.msra.mxu1 %v336_v1  ;;  %s2340_s22 = sshll.u32 %s325_s29, 3  ;;  %v329_v7 = vld [vmem:[%s3286_s1] sm:$0xff]  ;;  %v340_v10 = vld [vmem:[%s3286_s1 + $0x58] sm:$0xff]  ;;  %v339_v12 = vld [vmem:[%s3286_s1 + $0x50] sm:$0xff] }
  0x16   : > { %2472 = vmatprep.subr.mxu0 %v2781_v2  ;;  %2483 = vmatprep.subr.mxu1 %v2781_v2  ;;  %s327_s27 = scalar_lea.vmem %s3285_s0, %s2340_s22  ;;  %v333_v8 = vld [vmem:[%s3286_s1 + $0x20] sm:$0xff]  ;;  %v344_v11 = vld [vmem:[%s3286_s1 + $0x78] sm:$0xff]  ;;  %v343_v13 = vld [vmem:[%s3286_s1 + $0x70] sm:$0xff]  ;;  %s321_s22 = sand.u32 1, %s2771_s10  }
  0x17   : > { %2473 = vmatpush3.msra.mxu0 %v331_v3  ;;  %2484 = vmatpush3.msra.mxu1 %v335_v4  ;;  %v2917_v9 = vld [vmem:[%s327_s27] sm:$0xff]  ;;  %v338_v14 = vld [vmem:[%s3286_s1 + $0x48] sm:$0xff]  ;;  %v660_v18 = vld [vmem:[%s3288_s3 + $0x18] sm:$0xff]  ;;  %s2339_s23 = sshll.u32 %s321_s22, 3  ;;  %s2263_s17 = scalar_lea.sflag [#allocation3], %s321_s22 }
  0x18   : > { %2474 = vmatprep.subr.mxu0 %v2781_v2  ;;  %2485 = vmatprep.subr.mxu1 %v2781_v2  ;;  %v342_v15 = vld [vmem:[%s3286_s1 + $0x68] sm:$0xff]  ;;  %v337_v16 = vld [vmem:[%s3286_s1 + $0x40] sm:$0xff]  ;;  %v664_v19 = vld [vmem:[%s3288_s3 + $0x38] sm:$0xff]  ;;  %s323_s27 = scalar_lea.vmem [#allocation2], %s2339_s23  ;;  %s2725_s23 = scalar_lea.vmem %s2724_s13, 256 }
  0x19   : > { %2475 = vmatpush3.msra.mxu0 %v330_v5  ;;  %2486 = vmatpush3.msra.mxu1 %v334_v6  ;;  %v341_v17 = vld [vmem:[%s3286_s1 + $0x60] sm:$0xff]  ;;  %v659_v20 = vld [vmem:[%s3288_s3 + $0x10] sm:$0xff]  ;;  %v658_v22 = vld [vmem:[%s3288_s3 + $0x8] sm:$0xff]  ;;  %s2276_s28 = sshll.u32 %s323_s27, 4  ;;  %s2277_s28 = int_to_ptr.vmem [resolvable:$true] %s2276_s28 }
  0x1a   : > { %2476 = vmatprep.subr.mxu0 %v2781_v2  ;;  %2487 = vmatprep.subr.mxu1 %v2781_v2  ;;  %v663_v21 = vld [vmem:[%s3288_s3 + $0x30] sm:$0xff]  ;;  %v662_v23 = vld [vmem:[%s3288_s3 + $0x28] sm:$0xff]  ;;  %v657_v24 = vld [vmem:[%s3288_s3] sm:$0xff]  ;;  %s2719_s21 = scalar_lea.vmem %s2277_s28, 128  ;;  %p2726_p0 = scmp.lt.s32.totalorder %s2277_s28, %s2724_s13 }
  0x1b   : > { %2477 = vmatpush3.msra.mxu0 %v329_v7  ;;  %2478 = vmatprep.mubr.msk.f32.mxu0 %vm2782_vm1, %v2781_v2  ;;  %v661_v25 = vld [vmem:[%s3288_s3 + $0x20] sm:$0xff]  ;;  %v668_v26 = vld [vmem:[%s3288_s3 + $0x58] sm:$0xff]  ;;  %v667_v28 = vld [vmem:[%s3288_s3 + $0x50] sm:$0xff]  ;;  %p2720_p11 = scmp.ne.s32.totalorder %s2277_s28, %s2719_s21  ;;  %p2727_p1 = scmp.lt.s32.totalorder %s2725_s23, %s2719_s21 }
  0x1c   : > { %2488 = vmatpush3.msra.mxu1 %v333_v8  ;;  %2479 = vmatmul.mubr.msk.f32.vlgmr.msra.gmra.mxu0 %vm373_vm0, %v2917_v9  ;;  %v672_v27 = vld [vmem:[%s3288_s3 + $0x78] sm:$0xff]  ;;  %v671_v29 = vld [vmem:[%s3288_s3 + $0x70] sm:$0xff]  ;;  %v666_v30 = vld [vmem:[%s3288_s3 + $0x48] sm:$0xff] }
  0x1d   : > { %2489 = vmatprep.mubr.msk.f32.mxu1 %vm2782_vm1, %v2781_v2  ;;  %2492 = vmatprep.subr.mxu0 %v2781_v2  ;;  %v670_v31 = vld [vmem:[%s3288_s3 + $0x68] sm:$0xff]  ;;  %v665_v32 = vld [vmem:[%s3288_s3 + $0x40] sm:$0xff]  ;;  %v984_v34 = vld [vmem:[%s3290_s5 + $0x18] sm:$0xff]  ;;  %p2721_p12 = pnand %p2720_p11, %p2872_p5  ;;  %p2728_p2 = por %p2727_p1, %p2726_p0 }
  0x1e   : > { %2503 = vmatprep.subr.mxu1 %v2781_v2  ;;  %2490 = vmatmul.mubr.msk.f32.vlgmr.msra.gmra.mxu1 %vm373_vm0, %v2917_v9  ;;  %v669_v33 = vld [vmem:[%s3288_s3 + $0x60] sm:$0xff]  ;;  %v988_v35 = vld [vmem:[%s3290_s5 + $0x38] sm:$0xff]  ;;  %v983_v36 = vld [vmem:[%s3290_s5 + $0x10] sm:$0xff] }
  0x1f   : > { %2493 = vmatpush3.msra.mxu0 %v340_v10  ;;  %2504 = vmatpush3.msra.mxu1 %v344_v11  ;;  %v987_v37 = vld [vmem:[%s3290_s5 + $0x30] sm:$0xff]  ;;  %v982_v38 = vld [vmem:[%s3290_s5 + $0x8] sm:$0xff]  ;;  %v981_v40 = vld [vmem:[%s3290_s5] sm:$0xff]  ;;  %p2722_p13 = pneg %p2721_p12 }
  0x20   : > { %2494 = vmatprep.subr.mxu0 %v2781_v2  ;;  %2505 = vmatprep.subr.mxu1 %v2781_v2  ;;  %v986_v39 = vld [vmem:[%s3290_s5 + $0x28] sm:$0xff]  ;;  %v985_v41 = vld [vmem:[%s3290_s5 + $0x20] sm:$0xff]  ;;  %v992_v42 = vld [vmem:[%s3290_s5 + $0x58] sm:$0xff] }
  0x21   : > { %2495 = vmatpush3.msra.mxu0 %v339_v12  ;;  %2506 = vmatpush3.msra.mxu1 %v343_v13  ;;  %v996_v43 = vld [vmem:[%s3290_s5 + $0x78] sm:$0xff]  ;;  %v991_v44 = vld [vmem:[%s3290_s5 + $0x50] sm:$0xff]  ;;  %v990_v46 = vld [vmem:[%s3290_s5 + $0x48] sm:$0xff]  ;;  %p2729_p3 = pnand %p2728_p2, %p2722_p13 }
  0x22   : > { %2496 = vmatprep.subr.mxu0 %v2781_v2  ;;  %2507 = vmatprep.subr.mxu1 %v2781_v2  ;;  %v995_v45 = vld [vmem:[%s3290_s5 + $0x70] sm:$0xff]  ;;  %v994_v47 = vld [vmem:[%s3290_s5 + $0x68] sm:$0xff]  ;;  %v989_v48 = vld [vmem:[%s3290_s5 + $0x40] sm:$0xff] }
  0x23   : > { %2497 = vmatpush3.msra.mxu0 %v338_v14  ;;  %2508 = vmatpush3.msra.mxu1 %v342_v15  ;;  %v993_v49 = vld [vmem:[%s3290_s5 + $0x60] sm:$0xff] }
  0x24   : > { %2498 = vmatprep.subr.mxu0 %v2781_v2  ;;  %2509 = vmatprep.subr.mxu1 %v2781_v2  ;;  %v2349_v58 = vld [vmem:[%s3289_s4] ss:$0 sm:$0xff]  ;;  %v2350_v59 = vld [vmem:[%s3289_s4 + $0x1] ss:$0 sm:$0xff]  ;;  %v2351_v7 = vld [vmem:[%s3289_s4 + $0x2] ss:$0 sm:$0xff] }
  0x25   : > { %2499 = vmatpush3.msra.mxu0 %v337_v16  ;;  %2500 = vmatprep.mubr.msk.f32.mxu0 %vm2782_vm1, %v2781_v2  ;;  %v2341_v62 = vld [vmem:[%s3287_s2] ss:$0 sm:$0xff]  ;;  %v2342_v63 = vld [vmem:[%s3287_s2 + $0x1] ss:$0 sm:$0xff]  ;;  %v2352_v8 = vld [vmem:[%s3289_s4 + $0x3] ss:$0 sm:$0xff] }
  0x26   : > { %2510 = vmatpush3.msra.mxu1 %v341_v17  ;;  %2501 = vmatmul.mubr.msk.f32.vlgmr.msra.gmra.mxu0 %vm373_vm0, %v2917_v9  ;;  %v2343_v11 = vld [vmem:[%s3287_s2 + $0x2] ss:$0 sm:$0xff]  ;;  %v2344_v12 = vld [vmem:[%s3287_s2 + $0x3] ss:$0 sm:$0xff] }
  0x27   : > { %2511 = vmatprep.mubr.msk.f32.mxu1 %vm2782_vm1, %v2781_v2  ;;  %2514 = vmatprep.subr.mxu0 %v2781_v2 }
  0x28   : > { %2525 = vmatprep.subr.mxu1 %v2781_v2  ;;  %2512 = vmatmul.mubr.msk.f32.vlgmr.msra.gmra.mxu1 %vm373_vm0, %v2917_v9 }
  0x29   : > { %2515 = vmatpush3.msra.mxu0 %v660_v18  ;;  %2526 = vmatpush3.msra.mxu1 %v664_v19  ;;  %v2357_v19 = vld [vmem:[%s3291_s6] ss:$0 sm:$0xff] }
  0x2a   : > { %2516 = vmatprep.subr.mxu0 %v2781_v2  ;;  %2527 = vmatprep.subr.mxu1 %v2781_v2 }
  0x2b   : > { %2517 = vmatpush3.msra.mxu0 %v659_v20  ;;  %2528 = vmatpush3.msra.mxu1 %v663_v21  ;;  %v2358_v20 = vld [vmem:[%s3291_s6 + $0x1] ss:$0 sm:$0xff] }
  0x2c   : > { %2518 = vmatprep.subr.mxu0 %v2781_v2  ;;  %2529 = vmatprep.subr.mxu1 %v2781_v2 }
  0x2d   : > { %2519 = vmatpush3.msra.mxu0 %v658_v22  ;;  %2530 = vmatpush3.msra.mxu1 %v662_v23 }
  0x2e   : > { %2520 = vmatprep.subr.mxu0 %v2781_v2  ;;  %2531 = vmatprep.subr.mxu1 %v2781_v2 }
  0x2f   : > { %2521 = vmatpush3.msra.mxu0 %v657_v24  ;;  %2522 = vmatprep.mubr.msk.f32.mxu0 %vm2782_vm1, %v2781_v2 }
  0x30   : > { %2532 = vmatpush3.msra.mxu1 %v661_v25  ;;  %2533 = vmatprep.mubr.msk.f32.mxu1 %vm2782_vm1, %v2781_v2 }
  0x31   : > { %2523 = vmatmul.mubr.msk.f32.vlgmr.msra.gmra.mxu0 %vm373_vm0, %v2917_v9  ;;  %2534 = vmatmul.mubr.msk.f32.vlgmr.msra.gmra.mxu1 %vm373_vm0, %v2917_v9 }
  0x32   : > { %2536 = vmatprep.subr.mxu0 %v2781_v2  ;;  %2547 = vmatprep.subr.mxu1 %v2781_v2 }
  0x33   : > { %2537 = vmatpush3.msra.mxu0 %v668_v26  ;;  %2548 = vmatpush3.msra.mxu1 %v672_v27 }
  0x34   : > { %2538 = vmatprep.subr.mxu0 %v2781_v2  ;;  %2549 = vmatprep.subr.mxu1 %v2781_v2 }
  0x35   : > { %2539 = vmatpush3.msra.mxu0 %v667_v28  ;;  %2550 = vmatpush3.msra.mxu1 %v671_v29 }
  0x36   : > { %2540 = vmatprep.subr.mxu0 %v2781_v2  ;;  %2551 = vmatprep.subr.mxu1 %v2781_v2 }
  0x37   : > { %2541 = vmatpush3.msra.mxu0 %v666_v30  ;;  %2552 = vmatpush3.msra.mxu1 %v670_v31 }
  0x38   : > { %2542 = vmatprep.subr.mxu0 %v2781_v2  ;;  %2553 = vmatprep.subr.mxu1 %v2781_v2 }
  0x39   : > { %2543 = vmatpush3.msra.mxu0 %v665_v32  ;;  %2544 = vmatprep.mubr.msk.f32.mxu0 %vm2782_vm1, %v2781_v2 }
  0x3a   : > { %2554 = vmatpush3.msra.mxu1 %v669_v33  ;;  %2555 = vmatprep.mubr.msk.f32.mxu1 %vm2782_vm1, %v2781_v2 }
  0x3b   : > { %2545 = vmatmul.mubr.msk.f32.vlgmr.msra.gmra.mxu0 %vm373_vm0, %v2917_v9  ;;  %2556 = vmatmul.mubr.msk.f32.vlgmr.msra.gmra.mxu1 %vm373_vm0, %v2917_v9 }
  0x3c   : > { %2558 = vmatprep.subr.mxu0 %v2781_v2  ;;  %2569 = vmatprep.subr.mxu1 %v2781_v2 }
  0x3d   : > { %2566 = vmatprep.mubr.msk.f32.mxu0 %vm2782_vm1, %v2781_v2  ;;  %2577 = vmatprep.mubr.msk.f32.mxu1 %vm2782_vm1, %v2781_v2 }
  0x3e   : > { %2559 = vmatpush3.msra.mxu0 %v984_v34  ;;  %2570 = vmatpush3.msra.mxu1 %v988_v35 }
  0x3f   : > { %2560 = vmatprep.subr.mxu0 %v2781_v2  ;;  %2571 = vmatprep.subr.mxu1 %v2781_v2 }
  0x40   : > { %2561 = vmatpush3.msra.mxu0 %v983_v36  ;;  %2572 = vmatpush3.msra.mxu1 %v987_v37 }
  0x41   : > { %2562 = vmatprep.subr.mxu0 %v2781_v2  ;;  %2573 = vmatprep.subr.mxu1 %v2781_v2 }
  0x42   : > { %2563 = vmatpush3.msra.mxu0 %v982_v38  ;;  %2574 = vmatpush3.msra.mxu1 %v986_v39 }
  0x43   : > { %2564 = vmatprep.subr.mxu0 %v2781_v2  ;;  %2575 = vmatprep.subr.mxu1 %v2781_v2 }
  0x44   : > { %2565 = vmatpush3.msra.mxu0 %v981_v40  ;;  %2576 = vmatpush3.msra.mxu1 %v985_v41 }
  0x45   : > { %2580 = vmatprep.subr.mxu0 %v2781_v2  ;;  %2591 = vmatprep.subr.mxu1 %v2781_v2 }
  0x46   : > { %2567 = vmatmul.mubr.msk.f32.vlgmr.msra.gmra.mxu0 %vm373_vm0, %v2917_v9  ;;  %2578 = vmatmul.mubr.msk.f32.vlgmr.msra.gmra.mxu1 %vm373_vm0, %v2917_v9 }
  0x47   : > { %2581 = vmatpush3.msra.mxu0 %v992_v42  ;;  %2592 = vmatpush3.msra.mxu1 %v996_v43 }
  0x48   : > { %2582 = vmatprep.subr.mxu0 %v2781_v2  ;;  %2593 = vmatprep.subr.mxu1 %v2781_v2 }
  0x49   : > { %2583 = vmatpush3.msra.mxu0 %v991_v44  ;;  %2594 = vmatpush3.msra.mxu1 %v995_v45 }
  0x4a   : > { %2584 = vmatprep.subr.mxu0 %v2781_v2  ;;  %2595 = vmatprep.subr.mxu1 %v2781_v2 }
  0x4b   : > { %2585 = vmatpush3.msra.mxu0 %v990_v46  ;;  %2596 = vmatpush3.msra.mxu1 %v994_v47 }
  0x4c   : > { %2586 = vmatprep.subr.mxu0 %v2781_v2  ;;  %2597 = vmatprep.subr.mxu1 %v2781_v2 }
  0x4d   : > { %2588 = vmatprep.mubr.msk.f32.mxu0 %vm2782_vm1, %v2781_v2  ;;  %2599 = vmatprep.mubr.msk.f32.mxu1 %vm2782_vm1, %v2781_v2 }
  0x4e   : > { %2587 = vmatpush3.msra.mxu0 %v989_v48  ;;  %2598 = vmatpush3.msra.mxu1 %v993_v49 }
  0x4f   : > { %2589 = vmatmul.mubr.msk.f32.vlgmr.msra.gmra.mxu0 %vm373_vm0, %v2917_v9  ;;  %2600 = vmatmul.mubr.msk.f32.vlgmr.msra.gmra.mxu1 %vm373_vm0, %v2917_v9 }
  0x50   : > { %2602 = vmatprep.subr.mxu0 %v2781_v2  ;;  %2607 = vmatprep.subr.mxu1 %v2781_v2 }
  0x51   : > { %2604 = vmatprep.mubr.msk.f32.mxu0 %vm2782_vm1, %v2781_v2  ;;  %2609 = vmatprep.mubr.msk.f32.mxu1 %vm2782_vm1, %v2781_v2 }
  0xdc   : > { %v443_v50 = vpop.f32.mrf.mxu0 }
  0xdd   : > { %v444_v5 = vadd.f32 %v2341_v62, %v443_v50 }
  0xde   : > { %v2480_v51 = vpop.f32.mrf.mxu0  ;;  %v513_v52 = vpop.f32.mrf.mxu1 }
  0xdf   : > { %v514_v6 = vadd.f32 %v2342_v63, %v513_v52 }
  0xe0   : > { %v2491_v53 = vpop.f32.mrf.mxu1 }
  0xe6   : > { %v583_v54 = vpop.f32.mrf.mxu0 }
  0xe7   : > { %v584_v17 = vadd.f32 %v2343_v11, %v583_v54 }
  0xe8   : > { %v2502_v55 = vpop.f32.mrf.mxu0  ;;  %v653_v56 = vpop.f32.mrf.mxu1 }
  0xe9   : > { %v654_v18 = vadd.f32 %v2344_v12, %v653_v56  ;;  %v2360_v12 = vld [vmem:[%s3291_s6 + $0x3] ss:$0 sm:$0xff] }
  0xea   : > { %v2513_v57 = vpop.f32.mrf.mxu1 }
  0xf1   : > { %v767_v60 = vpop.f32.mrf.mxu0  ;;  %v837_v61 = vpop.f32.mrf.mxu1 }
  0xf2   : > { %v768_v0 = vadd.f32 %v2349_v58, %v767_v60  ;;  %v838_v1 = vadd.f32 %v2350_v59, %v837_v61 }
  0xf3   : > { %v2524_v3 = vpop.f32.mrf.mxu0  ;;  %v2535_v4 = vpop.f32.mrf.mxu1 }
  0xf4   : > { %2603 = vmatpush3.xpose.msk.msra.mxu0 %vm1305_vm2, %v768_v0  ;;  %2608 = vmatpush3.xpose.msk.msra.mxu1 %vm1305_vm2, %v838_v1 }
  0xf5   : > { %2612 = vmatprep.subr.mxu0 %v2781_v2  ;;  %2617 = vmatprep.subr.mxu1 %v2781_v2 }
  0xf7   : > { %2605 = vmatmul.mubr.msk.f32.vlgmr.msra.gmra.mxu0 %vm1305_vm2, %v444_v5  ;;  %2610 = vmatmul.mubr.msk.f32.vlgmr.msra.gmra.mxu1 %vm1305_vm2, %v514_v6 }
  0xf8   : > { %2614 = vmatprep.mubr.msk.f32.mxu0 %vm2782_vm1, %v2781_v2  ;;  %2619 = vmatprep.mubr.msk.f32.mxu1 %vm2782_vm1, %v2781_v2 }
  0xfb   : > { %v907_v9 = vpop.f32.mrf.mxu0  ;;  %v977_v10 = vpop.f32.mrf.mxu1 }
  0xfc   : > { %v908_v13 = vadd.f32 %v2351_v7, %v907_v9  ;;  %v978_v14 = vadd.f32 %v2352_v8, %v977_v10  ;;  %v2359_v7 = vld [vmem:[%s3291_s6 + $0x2] ss:$0 sm:$0xff] }
  0xfd   : > { %v2546_v15 = vpop.f32.mrf.mxu0  ;;  %v2557_v16 = vpop.f32.mrf.mxu1 }
  0xfe   : > { %2613 = vmatpush3.xpose.msk.msra.mxu0 %vm1305_vm2, %v908_v13  ;;  %2618 = vmatpush3.xpose.msk.msra.mxu1 %vm1305_vm2, %v978_v14 }
  0xff   : > { %2622 = vmatprep.subr.mxu0 %v2781_v2  ;;  %2627 = vmatprep.subr.mxu1 %v2781_v2 }
 0x101   : > { %2615 = vmatmul.mubr.msk.f32.vlgmr.msra.gmra.mxu0 %vm1305_vm2, %v584_v17  ;;  %2620 = vmatmul.mubr.msk.f32.vlgmr.msra.gmra.mxu1 %vm1305_vm2, %v654_v18 }
 0x102   : > { %2624 = vmatprep.mubr.msk.f32.mxu0 %vm2782_vm1, %v2781_v2  ;;  %2629 = vmatprep.mubr.msk.f32.mxu1 %vm2782_vm1, %v2781_v2 }
 0x106   : > { %v1091_v21 = vpop.f32.mrf.mxu0  ;;  %v1161_v22 = vpop.f32.mrf.mxu1 }
 0x107   : > { %v1092_v23 = vadd.f32 %v2357_v19, %v1091_v21  ;;  %v1162_v24 = vadd.f32 %v2358_v20, %v1161_v22  ;;  %v1950_v20 = vld [vmem:[%s3292_s7] sm:$0xff]  ;;  %v1951_v21 = vld [vmem:[%s3292_s7 + $0x8] sm:$0xff]  ;;  %v1952_v22 = vld [vmem:[%s3292_s7 + $0x10] sm:$0xff] }
 0x108   : > { %v2568_v25 = vpop.f32.mrf.mxu0  ;;  %v2579_v26 = vpop.f32.mrf.mxu1 }
 0x109   : > { %2623 = vmatpush3.msra.mxu0 %v1092_v23  ;;  %2628 = vmatpush3.msra.mxu1 %v1162_v24  ;;  %v1953_v25 = vld [vmem:[%s3292_s7 + $0x18] sm:$0xff] }
 0x10a   : > { %2632 = vmatprep.subr.mxu0 %v2781_v2  ;;  %2637 = vmatprep.subr.mxu1 %v2781_v2 }
 0x10f   : > { %v3187_v27 = vpop.f32.mrf.mxu0  ;;  %v3189_v28 = vpop.f32.mrf.mxu1 }
 0x110   : > { %v1232_v11 = vadd.f32 %v2359_v7, %v3187_v27  ;;  %v1302_v15 = vadd.f32 %v2360_v12, %v3189_v28 }
 0x111   : > { %v2590_v29 = vpop.f32.mrf.mxu0  ;;  %v2601_v30 = vpop.f32.mrf.mxu1 }
 0x1b7   : > { %v1378_v31 = vpop.f32.mrf.mxu0  ;;  %v1454_v32 = vpop.f32.mrf.mxu1 }
 0x1b8   : > { %v1610_v33 = vmul.f32 0.17677669, %v1378_v31  ;;  %v1611_v36 = vmul.f32 0.17677669, %v1454_v32 }
 0x1b9   : > { %v2606_v34 = vpop.f32.mrf.mxu0  ;;  %v2611_v35 = vpop.f32.mrf.mxu1 }
 0x1ba   : > { %v1614_v37 = vsel %vm1305_vm2, %v1610_v33, -inf  ;;  %v1617_v38 = vsel %vm1305_vm2, %v1611_v36, -inf }
 0x1bb   : > { %1615 = vmax.xlane.f32.xlu0 %v1614_v37 }
 0x1bf   : > { %1618 = vmax.xlane.f32.xlu0 %v1617_v38 }
 0x1c1   : > { %v1606_v39 = vpop.f32.mrf.mxu1  ;;  %v1530_v40 = vpop.f32.mrf.mxu0 }
 0x1c2   : > { %v1612_v41 = vmul.f32 0.17677669, %v1530_v40  ;;  %v1613_v44 = vmul.f32 0.17677669, %v1606_v39 }
 0x1c3   : > { %v2616_v42 = vpop.f32.mrf.mxu0  ;;  %v2621_v43 = vpop.f32.mrf.mxu1 }
 0x1c4   : > { %v1620_v45 = vsel %vm1305_vm2, %v1612_v41, -inf  ;;  %v1623_v46 = vsel %vm1305_vm2, %v1613_v44, -inf }
 0x1c5   : > { %1621 = vmax.xlane.f32.xlu1 %v1620_v45 }
 0x1c9   : > { %1624 = vmax.xlane.f32.xlu1 %v1623_v46 }
 0x244   : > { %v1616_v47 = vpop.xlane.xlu0 %1615 }
 0x245   : > { %v1626_v48 = vsub.f32 %v1610_v33, %v1616_v47 }
 0x247   : > { %v1630_v49 = vmul.f32 1.442695, %v1626_v48 }
 0x248   : > { %v1619_v50 = vpop.xlane.xlu0 %1618 }
 0x249   : > { %2703 = vpow2.f32 %v1630_v49  ;;  %v1627_v51 = vsub.f32 %v1611_v36, %v1619_v50 }
 0x24b   : > { %v1632_v52 = vmul.f32 1.442695, %v1627_v51 }
 0x24d   : > { %2705 = vpow2.f32 %v1632_v52 }
 0x24e   : > { %v1622_v53 = vpop.xlane.xlu1 %1621 }
 0x24f   : > { %v1628_v54 = vsub.f32 %v1612_v41, %v1622_v53 }
 0x251   : > { %v1634_v55 = vmul.f32 1.442695, %v1628_v54 }
 0x252   : > { %v1625_v56 = vpop.xlane.xlu1 %1624 }
 0x253   : > { %2707 = vpow2.f32 %v1634_v55  ;;  %v1629_v57 = vsub.f32 %v1613_v44, %v1625_v56  ;;  %v2381_v44 = vld [vmem:[%s3293_s8] ss:$0 sm:$0xff] }
 0x255   : > { %v1636_v58 = vmul.f32 1.442695, %v1629_v57 }
 0x256   : > { %v2704_v59 = vpop.eup %2703 }
 0x257   : > { %2709 = vpow2.f32 %v1636_v58  ;;  %v1638_v60 = vsel %vm1305_vm2, %v2704_v59, 0.0 }
 0x258   : > { %1639 = vadd.xlane.f32.xlu0 %v1638_v60 }
 0x25a   : > { %v2706_v61 = vpop.eup %2705 }
 0x25b   : > { %v1641_v62 = vsel %vm1305_vm2, %v2706_v61, 0.0 }
 0x25c   : > { %1642 = vadd.xlane.f32.xlu1 %v1641_v62 }
 0x260   : > { %v2708_v63 = vpop.eup %2707 }
 0x261   : > { %v1644_v0 = vsel %vm1305_vm2, %v2708_v63, 0.0 }
 0x262   : > { %1645 = vadd.xlane.f32.xlu0 %v1644_v0 }
 0x264   : > { %v2710_v1 = vpop.eup %2709 }
 0x265   : > { %v1647_v3 = vsel %vm1305_vm2, %v2710_v1, 0.0 }
 0x266   : > { %1648 = vadd.xlane.f32.xlu1 %v1647_v3 }
 0x2e1   : > { %v1640_v4 = vpop.xlane.xlu0 %1639 }
 0x2e2   : > { %2711 = vrcp.f32 %v1640_v4 }
 0x2e5   : > { %v1643_v5 = vpop.xlane.xlu1 %1642 }
 0x2e6   : > { %2713 = vrcp.f32 %v1643_v5 }
 0x2eb   : > { %v1646_v6 = vpop.xlane.xlu0 %1645 }
 0x2ec   : > { %2715 = vrcp.f32 %v1646_v6 }
 0x2ef   : > { %v2712_v8 = vpop.eup %2711  ;;  %v1649_v9 = vpop.xlane.xlu1 %1648 }
 0x2f0   : > { %2717 = vrcp.f32 %v1649_v9  ;;  %v1654_v10 = vmul.f32 %v2712_v8, %v2704_v59 }
 0x2f2   : > { %2625 = vmatmul.mubr.msk.f32.vlgmr.msra.gmra.mxu0 %vm1305_vm2, %v1654_v10 }
 0x2f3   : > { %v2714_v13 = vpop.eup %2713  ;;  %2633 = vmatpush3.msra.mxu0 %v1232_v11  ;;  %2634 = vmatprep.mubr.msk.f32.mxu0 %vm2782_vm1, %v2781_v2 }
 0x2f4   : > { %v1655_v14 = vmul.f32 %v2714_v13, %v2706_v61  ;;  %2642 = vmatprep.subr.mxu0 %v2781_v2 }
 0x2f6   : > { %2630 = vmatmul.mubr.msk.f32.vlgmr.msra.gmra.mxu1 %vm1305_vm2, %v1655_v14 }
 0x2f7   : > { %2638 = vmatpush3.msra.mxu1 %v1302_v15  ;;  %2639 = vmatprep.mubr.msk.f32.mxu1 %vm2782_vm1, %v2781_v2 }
 0x2f8   : > { %2647 = vmatprep.subr.mxu1 %v2781_v2 }
 0x2f9   : > { %v2716_v16 = vpop.eup %2715 }
 0x2fa   : > { %v1656_v17 = vmul.f32 %v2716_v16, %v2708_v63 }
 0x2fc   : > { %2635 = vmatmul.mubr.msk.f32.vlgmr.msra.gmra.mxu0 %vm1305_vm2, %v1656_v17 }
 0x2fd   : > { %v2718_v18 = vpop.eup %2717  ;;  %2644 = vmatprep.mubr.msk.f32.mxu0 %vm2782_vm1, %v2781_v2  ;;  %2643 = vmatpush3.msra.mxu0 %v1950_v20 }
 0x2fe   : > { %v1657_v19 = vmul.f32 %v2718_v18, %v2710_v1  ;;  %2652 = vmatprep.subr.mxu0 %v2781_v2 }
 0x300   : > { %2640 = vmatmul.mubr.msk.f32.vlgmr.msra.gmra.mxu1 %vm1305_vm2, %v1657_v19 }
 0x301   : > { %2649 = vmatprep.mubr.msk.f32.mxu1 %vm2782_vm1, %v2781_v2  ;;  %2648 = vmatpush3.msra.mxu1 %v1951_v21 }
 0x302   : > { %2657 = vmatprep.subr.mxu1 %v2781_v2 }
 0x3b2   : > { %v1727_v23 = vpop.f32.mrf.mxu0 }
 0x3b3   : > { %2645 = vmatmul.mubr.msk.f32.vlgmr.msra.gmra.mxu0 %vm1305_vm2, %v1727_v23 }
 0x3b4   : > { %v2626_v24 = vpop.f32.mrf.mxu0  ;;  %2653 = vmatpush3.msra.mxu0 %v1952_v22  ;;  %2654 = vmatprep.mubr.msk.f32.mxu0 %vm2782_vm1, %v2781_v2 }
 0x3b6   : > { %v1800_v26 = vpop.f32.mrf.mxu1 }
 0x3b7   : > { %2650 = vmatmul.mubr.msk.f32.vlgmr.msra.gmra.mxu1 %vm1305_vm2, %v1800_v26 }
 0x3b8   : > { %v2631_v27 = vpop.f32.mrf.mxu1  ;;  %2658 = vmatpush3.msra.mxu1 %v1953_v25  ;;  %2659 = vmatprep.mubr.msk.f32.mxu1 %vm2782_vm1, %v2781_v2 }
 0x3bc   : > { %v1873_v28 = vpop.f32.mrf.mxu0 }
 0x3bd   : > { %2655 = vmatmul.mubr.msk.f32.vlgmr.msra.gmra.mxu0 %vm1305_vm2, %v1873_v28 }
 0x3be   : > { %v2636_v29 = vpop.f32.mrf.mxu0 }
 0x3c0   : > { %v1946_v30 = vpop.f32.mrf.mxu1 }
 0x3c1   : > { %2660 = vmatmul.mubr.msk.f32.vlgmr.msra.gmra.mxu1 %vm1305_vm2, %v1946_v30 }
 0x3c2   : > { %v2641_v31 = vpop.f32.mrf.mxu1 }
 0x473   : > { %v2023_v32 = vpop.f32.mrf.mxu0 }
 0x474   : > { %v2246_v2 = vsel %vm373_vm0, %v2023_v32, 0.0 }
 0x475   : > { %v2646_v33 = vpop.f32.mrf.mxu0 }
 0x477   : > { %v2096_v34 = vpop.f32.mrf.mxu1 }
 0x478   : > { %v2247_v36 = vsel %vm373_vm0, %v2096_v34, 0.0 }
 0x479   : > { %v2651_v35 = vpop.f32.mrf.mxu1  ;;  %v2248_v39 = vadd.f32 %v2247_v36, %v2246_v2 }
 0x47d   : > { %v2169_v37 = vpop.f32.mrf.mxu0 }
 0x47e   : > { %v2249_v38 = vsel %vm373_vm0, %v2169_v37, 0.0 }
 0x47f   : > { %v2656_v40 = vpop.f32.mrf.mxu0  ;;  %v2250_v41 = vadd.f32 %v2249_v38, %v2248_v39 }
 0x481   : > { %v2242_v42 = vpop.f32.mrf.mxu1 }
 0x482   : > { %v2251_v43 = vsel %vm373_vm0, %v2242_v42, 0.0 }
 0x483   : > { %v2252_v45 = vadd.f32 %v2251_v43, %v2250_v41  ;;  %v2661_v46 = vpop.f32.mrf.mxu1 }
 0x485   : > { %v2260_v47 = vadd.f32 %v2381_v44, %v2252_v45 }
 0x487   : > { %2261 = vst.msk [vmem:[%s323_s27] sm:$0xff] %vm373_vm0, %v2260_v47 }
 0x488   : > { %2732 = shalt.err (!%p2729_p3)
}
 0x489   : > { %s2733_s25 = scalar_lea.hbm %s2274_s16, 128  ;;  %s2737_s27 = scalar_lea.hbm %s3294_s9, 256 }
 0x48a   : > { %p2734_p4 = scmp.ne.s32.totalorder %s2274_s16, %s2733_s25  ;;  %p2738_p9 = scmp.lt.s32.totalorder %s2274_s16, %s3294_s9 }
 0x48b   : > { %p2739_p10 = scmp.lt.s32.totalorder %s2737_s27, %s2733_s25 }
 0x48c   : > { %p2735_p7 = pnand %p2734_p4, %p2872_p5 }
 0x48d   : > { %p2740_p11 = por %p2739_p10, %p2738_p9 }
 0x48e   : > { %p2736_p8 = pneg %p2735_p7 }
 0x490   : > { %p2741_p12 = pnand %p2740_p11, %p2736_p8 }
 0x492   : > { %2744 = shalt.err (!%p2741_p12)
}
 0x493   : > { %2662 = dma.vmem_to_hbm [thread:$0]  (%p2872_p5), %s2277_s28, 128, %s2274_s16, %s2263_s17  }
 0x494 PF: > { %p2668_p13 = scmp.ge.s32.totalorder %s2779_s12, 2  ;;  %s2288_s21 = sand.u32 1, %s2767_s30  }
 0x495   : > { %s2289_s24 = scalar_lea.sflag [#allocation3], %s2288_s21 }
 0x496   : > { %p2665_p0 = pnand %p2668_p13, %p2876_p6 }
 0x498   : > { %p2666_p1 = pneg %p2665_p0 }
 0x49a   : > { %2762 = dma.done.wait (%p2666_p1), %s2289_s24, 128  }
 0x49b   : > { %2764 = vsyncadd (%p2666_p1), %s2289_s24, 4294967168  ;;  %p19_p2 = scmp.ge.s32.totalorder %s2859_s15, 4   ;;  %s3297_s30 = smov %s2771_s10 }
 0x49c   : > { %s3298_s10 = smov %s2775_s11  ;;  %s3299_s11 = smov %s2870_s18 }
 0x49d   : > { %s3300_s12 = smov %s2859_s15  ;;  %21 = sbr.rel (!%p19_p2) target bundleno = 3 (0x3), region = 91 }
 0x4a2   :  { %2294 = vsyncpa [#allocation3], 1 }
 0x4a3   :  { %2296 = vsyncpa [#allocation3 + $0x1], 1 }

</bundles_post_ra>
